<compile_context>
chip_gen: v7x
topology: tpu7x:2x2x1
jax: 0.10.0
libtpu: 0.0.40
codegen_flags: <defaults>
</compile_context>

<pallas_src>
import functools
import math

import jax
import jax.numpy as jnp
from jax import lax
from jax.experimental import pallas as pl
from jax.experimental.pallas import tpu as pltpu


def _cdiv(a, b):
    return -(-a // b)


def _round_up(a, b):
    return _cdiv(a, b) * b


def _round_down(a, b):
    return (a // b) * b


def _sublane(dtype):
    # Rows per packed sublane tile: 8 for f32, 16 for bf16, 32 for int8/fp8.
    return max(8, 32 // jnp.dtype(dtype).itemsize)


def _vmem_budget_bytes():
    try:
        cap = pltpu.get_tpu_info().vmem_capacity_bytes
    except Exception:  # pragma: no cover - conservative fallback
        cap = 64 << 20
    # ~3/4 of physical VMEM: ~96 MiB on v5e/v6e (128 MiB), ~48 MiB on v7x (64 MiB).
    return (3 * cap) // 4


def _choose_k_tile(k, n_other, itemsize, budget, k_tile_cap):
    """Largest multiple-of-128 divisor of k that fits the per-operand budget.

    Falls back to the full extent (single reduction step) when k has no
    128-aligned divisor (typical for small in_features).
    """
    if k % 128 != 0:
        # TODO(synk): a huge, non-128-divisible in_features would need a padded
        # K tile; the module's typical sizes make the full-extent fallback fine.
        return k
    max_tk = min(
        k,
        k_tile_cap,
        max(128, _round_down(budget // (4 * max(n_other, 1) * itemsize), 128)),
    )
    max_tk = max(128, _round_down(max_tk, 128))
    for tk in range(max_tk, 127, -128):
        if k % tk == 0:
            return tk
    return k


# ------------------------------- forward -----------------------------------
def _linear_kernel_single(x_ref, wt_ref, o_ref):
    # Single reduction step: no f32 accumulator scratch / pl.when phases.
    o_ref[...] = jnp.dot(
        x_ref[...], wt_ref[...], preferred_element_type=jnp.float32
    ).astype(o_ref.dtype)


def _linear_kernel_ksplit(x_ref, wt_ref, o_ref, acc_ref):
    @pl.when(pl.program_id(1) == 0)
    def _():
        acc_ref[...] = jnp.zeros_like(acc_ref)

    # Standard (M,K)x(K,N) contraction: weight was pre-transposed once in the
    # wrapper, so no per-tile transpose is emitted inside the loop.
    acc_ref[...] += jnp.dot(
        x_ref[...], wt_ref[...], preferred_element_type=jnp.float32
    )

    @pl.when(pl.program_id(1) == pl.num_programs(1) - 1)
    def _():
        o_ref[...] = acc_ref[...].astype(o_ref.dtype)


def orth_penalized_linear_forward(x, weight, *, batch_tile=1024, k_tile=1024):
    """Forward of OrthPenalizedLinear (bias=False): y = x @ weight.T"""
    *batch_shape, in_features = x.shape
    out_features, w_in = weight.shape
    assert w_in == in_features
    assert in_features % out_features == 0

    out_dtype = x.dtype
    x_it = jnp.dtype(x.dtype).itemsize
    w_it = jnp.dtype(weight.dtype).itemsize
    o_it = jnp.dtype(out_dtype).itemsize

    x2 = x.reshape(-1, in_features)
    b = x2.shape[0]
    sub = _sublane(x.dtype)

    # Lane-dense output: pad the N axis of the (pre-transposed) weight to a
    # multiple of 128 so output stores are unmasked vst; sliced off after.
    n_pad = _round_up(out_features, 128)
    wt = weight.T  # (K, N): one-time wrapper transpose (tiny vs. x traffic)
    if n_pad != out_features:
        wt = jnp.pad(wt, ((0, 0), (0, n_pad - out_features)))

    budget = _vmem_budget_bytes()
    usable = budget - (4 << 20)  # headroom for compiler-internal scratch

    tk = _choose_k_tile(in_features, n_pad, w_it, usable, k_tile)
    nk = in_features // tk
    single_k = tk == in_features

    # Max rows per batch tile keeping double-buffered x / out tiles (+ the f32
    # accumulator when K is split) plus the weight tile within the VMEM budget.
    w_tile_bytes = 2 * tk * n_pad * w_it
    per_row = 2 * tk * x_it + 2 * n_pad * o_it + (0 if single_k else n_pad * 4)
    bm_cap = max(sub, _round_down(max((usable - w_tile_bytes) // per_row, sub), sub))
    bm_cap = min(bm_cap, batch_tile)

    # Balanced batch tiles; the ragged tail is a masked partial last block, so
    # there is NO wrapper-side jnp.pad (no extra HBM pass over x).
    num_b_tiles = _cdiv(b, bm_cap)
    if b >= 2 * sub:
        num_b_tiles = max(num_b_tiles, 2)  # keep both TensorCores busy (v7x)
    bm = _round_up(_cdiv(b, num_b_tiles), sub)
    grid_b = _cdiv(b, bm)

    vmem_limit = int(min(budget, 100 << 20))

    if single_k:
        kernel = _linear_kernel_single
        grid = (grid_b,)
        in_specs = [
            pl.BlockSpec((bm, in_features), lambda i: (i, 0)),
            # Constant index_map -> the weight is DMA'd from HBM only once.
            pl.BlockSpec((in_features, n_pad), lambda i: (0, 0)),
        ]
        out_specs = pl.BlockSpec((bm, n_pad), lambda i: (i, 0))
        scratch_shapes = []
        dim_sem = ("parallel",)
    else:
        kernel = _linear_kernel_ksplit
        grid = (grid_b, nk)
        # TODO(synk): if a trace shows exposed x DMA with a short K loop, add
        # pipeline_mode=pl.Buffered(3) on the x spec (VMEM-budget permitting).
        in_specs = [
            pl.BlockSpec((bm, tk), lambda i, k: (i, k)),
            pl.BlockSpec((tk, n_pad), lambda i, k: (k, 0)),
        ]
        out_specs = pl.BlockSpec((bm, n_pad), lambda i, k: (i, 0))
        scratch_shapes = [pltpu.VMEM((bm, n_pad), jnp.float32)]
        dim_sem = ("parallel", "arbitrary")

    out = pl.pallas_call(
        kernel,
        out_shape=jax.ShapeDtypeStruct((b, n_pad), out_dtype),
        grid_spec=pltpu.PrefetchScalarGridSpec(
            num_scalar_prefetch=0,
            grid=grid,
            in_specs=in_specs,
            out_specs=out_specs,
            scratch_shapes=scratch_shapes,
        ),
        compiler_params=pltpu.CompilerParams(
            dimension_semantics=dim_sem,
            vmem_limit_bytes=vmem_limit,
        ),
    )(x2, wt)

    if n_pad != out_features:
        out = out[:, :out_features]
    return out.reshape(*batch_shape, out_features)


# ------------------------------- penalty -----------------------------------
def _penalty_kernel(w_ref, o_ref, gram_ref, ssq_ref, *, n_in):
    k = pl.program_id(0)

    @pl.when(k == 0)
    def _():
        gram_ref[...] = jnp.zeros_like(gram_ref)
        ssq_ref[...] = jnp.zeros_like(ssq_ref)

    w = w_ref[...].astype(jnp.float32)
    # Small (n_out, n_out) Gram accumulated over K tiles, contracting the lane
    # (in_features) axis of both operands -> natural MXU feed, no (n_in, n_in)
    # intermediate, no sublane-axis contraction.
    gram_ref[...] += lax.dot_general(
        w, w,
        dimension_numbers=(((1,), (1,)), ((), ())),
        preferred_element_type=jnp.float32,
    )
    ssq_ref[...] += jnp.sum(w * w, keepdims=True)

    @pl.when(k == pl.num_programs(0) - 1)
    def _():
        g = gram_ref[...]
        # mean((W^T W - I_nin)^2) = (||W W^T||_F^2 - 2 tr(W W^T) + n_in) / n_in^2
        o_ref[...] = (
            jnp.sum(g * g, keepdims=True) - 2.0 * ssq_ref[...] + jnp.float32(n_in)
        ) / jnp.float32(n_in * n_in)


def orth_penalty(weight, *, k_tile=2048):
    """orth_stacked_penalty(weight) with its defaults (row=False, col=True)."""
    # TODO(synk): the row=True branch of orth_stacked_penalty (unused by the
    # module's penalty()) and the torch.isnan raise are not implemented here.
    n_out, n_in = weight.shape
    assert n_in >= n_out and n_in % n_out == 0

    w_it = jnp.dtype(weight.dtype).itemsize
    budget = _vmem_budget_bytes()
    tk = _choose_k_tile(n_in, n_out, w_it, budget - (4 << 20), k_tile)
    nk = n_in // tk

    out = pl.pallas_call(
        functools.partial(_penalty_kernel, n_in=n_in),
        out_shape=jax.ShapeDtypeStruct((1, 1), jnp.float32),
        grid_spec=pltpu.PrefetchScalarGridSpec(
            num_scalar_prefetch=0,
            grid=(nk,),
            in_specs=[pl.BlockSpec((n_out, tk), lambda k: (0, k))],
            out_specs=pl.BlockSpec((1, 1), lambda k: (0, 0)),
            scratch_shapes=[
                pltpu.VMEM((n_out, n_out), jnp.float32),
                pltpu.VMEM((1, 1), jnp.float32),
            ],
        ),
        compiler_params=pltpu.CompilerParams(
            dimension_semantics=("arbitrary",),
            vmem_limit_bytes=int(min(budget, 100 << 20)),
        ),
    )(weight)
    return out[0, 0]


# --------------------------------- main -------------------------------------
if __name__ == "__main__":
    key = jax.random.PRNGKey(0)
    k_w, k_x, k_x2 = jax.random.split(key, 3)

    in_features = 32
    out_features = 8  # in_features % out_features == 0 (module asserts this)
    batch, seq = 2, 8

    # Deterministic init mimicking nn.Linear's uniform(-1/sqrt(fan_in), 1/sqrt(fan_in)).
    bound = 1.0 / math.sqrt(in_features)
    weight = jax.random.uniform(
        k_w, (out_features, in_features), jnp.float32, minval=-bound, maxval=bound
    )
    x = jax.random.normal(k_x, (batch, seq, in_features), jnp.float32)

    y = jax.block_until_ready(orth_penalized_linear_forward(x, weight))
    y_ref = jnp.einsum("bsi,oi->bso", x, weight)
    assert y.shape == (batch, seq, out_features)
    assert jnp.allclose(y, y_ref, atol=1e-5, rtol=1e-5)

    # Ragged batch: exercises the masked partial last block (no jnp.pad of x).
    x_odd = jax.random.normal(k_x2, (2, 5, in_features), jnp.float32)
    y_odd = jax.block_until_ready(orth_penalized_linear_forward(x_odd, weight))
    y_odd_ref = jnp.einsum("bsi,oi->bso", x_odd, weight)
    assert y_odd.shape == (2, 5, out_features)
    assert jnp.allclose(y_odd, y_odd_ref, atol=1e-5, rtol=1e-5)

    # Penalty (not part of forward(), but part of the module's API).
    p = jax.block_until_ready(orth_penalty(weight))
    g = weight.T @ weight
    p_ref = jnp.mean((g - jnp.eye(in_features)) ** 2)
    assert jnp.allclose(p, p_ref, atol=1e-6, rtol=1e-5)

    print("KERNEL_OK")
</pallas_src>

<mosaic_0001>
module attributes {stable_mosaic.version = 11 : i64} {
  func.func @_linear_kernel_single(%arg0: i32, %arg1: memref<8x32xf32, #tpu.memory_space<vmem>>, %arg2: memref<32x128xf32, #tpu.memory_space<vmem>>, %arg3: memref<8x128xf32, #tpu.memory_space<vmem>>) attributes {dimension_semantics = [#tpu.dimension_semantics<parallel>], iteration_bounds = array<i64: 2>, scalar_prefetch = 0 : i64, scratch_operands = 0 : i64, tpu.core_type = #tpu.core_type<tc>, window_params = [{transform_indices = @transform_0, window_bounds = array<i64: 8, 32>}, {pipeline_mode = #tpu.pipeline_mode<synchronous>, transform_indices = @transform_1, window_bounds = array<i64: 32, 128>}, {transform_indices = @transform_2, window_bounds = array<i64: 8, 128>}]} {
    %c0 = arith.constant 0 : index
    %c0_0 = arith.constant 0 : index
    %0 = vector.load %arg1[%c0, %c0_0] : memref<8x32xf32, #tpu.memory_space<vmem>>, vector<8x32xf32>
    %c0_1 = arith.constant 0 : index
    %c0_2 = arith.constant 0 : index
    %1 = vector.load %arg2[%c0_1, %c0_2] : memref<32x128xf32, #tpu.memory_space<vmem>>, vector<32x128xf32>
    %cst = arith.constant dense<0.000000e+00> : vector<8x128xf32>
    %2 = tpu.matmul %0, %1, %cst {dimension_numbers = #tpu.dot_dimension_numbers<[1], [0], [0], [1], [0, 0, 1, 1], [], []>} : vector<8x32xf32>, vector<32x128xf32>, vector<8x128xf32> -> vector<8x128xf32>
    %c0_3 = arith.constant 0 : index
    %c0_4 = arith.constant 0 : index
    %3 = vector.load %arg3[%c0_3, %c0_4] : memref<8x128xf32, #tpu.memory_space<vmem>>, vector<8x128xf32>
    tpu.vector_store %arg3[%c0_3, %c0_4], %2 {strides = array<i32>} : memref<8x128xf32, #tpu.memory_space<vmem>>, vector<8x128xf32>,
    return
  }
  func.func @transform_0(%arg0: i32) -> (i32, i32) {
    %c0_i32 = arith.constant 0 : i32
    %c0_i32_0 = arith.constant 0 : i32
    return %arg0, %c0_i32 : i32, i32
  }
  func.func @transform_1(%arg0: i32) -> (i32, i32) {
    %c0_i32 = arith.constant 0 : i32
    %c0_i32_0 = arith.constant 0 : i32
    %c0_i32_1 = arith.constant 0 : i32
    return %c0_i32, %c0_i32_0 : i32, i32
  }
  func.func @transform_2(%arg0: i32) -> (i32, i32) {
    %c0_i32 = arith.constant 0 : i32
    %c0_i32_0 = arith.constant 0 : i32
    return %arg0, %c0_i32 : i32, i32
  }
}

</mosaic_0001>

<bundles_post_ra>
// kernel: tpu_custom_call.1
= control target key start
LH: loop header
LB: loop body
LE: loop exit
PB: predicated region body
PF: predicated region fallthrough
CT: control target
= control target key end

     0   :  { %7 = vsyncpa [#allocation3], 0  ;;  %s796_s0 = inlined_call_operand.hbm [shape: f32[16,32], index: 0, kind: input, shape index: {}]   ;;  %s797_s1 = inlined_call_operand.hbm [shape: f32[32,128], index: 1, kind: input, shape index: {}]   ;;  %s798_s2 = inlined_call_operand.hbm [shape: f32[16,128], index: 2, kind: output, shape index: {}]  }
   0x1   :  { %9 = vsyncpa [#allocation3 + $0x1], 0 }
   0x2   :  { %10 = vsyncpa [#allocation6], 0 }
   0x3   :  { %11 = vsyncpa [#allocation4], 0 }
   0x4   :  { %13 = vsyncpa [#allocation4 + $0x1], 0  ;;  %s600_s9 = smov 0   ;;  %s602_s10 = smov 0  }
   0x5   :  { %s604_s11 = smov 0   ;;  %s606_s12 = smov 0  }
   0x6 LB: > { %s621_s13 = sadd.s32 4294967295, %s575_s12   ;;  %s348_s14 = sadd.s32 4294967294, %s575_s12   ;;  %s575_s12 = sphi %s606_s12, %s818_s12   ;;  %s571_s11 = sphi %s604_s11, %s817_s11   ;;  %s567_s10 = sphi %s602_s10, %s816_s10   ;;  %s563_s9 = sphi %s600_s9, %s815_s9  }
   0x7   : > { %p39_p0 = scmp.ne.s32.totalorder %s567_s10, %s563_s9  ;;  %p799_p1 = scmp.eq.s32.totalorder %s621_s13, 0 }
   0x8   : > { %p90_p3 = scmp.eq.s32.totalorder %s348_s14, 1  ;;  %p349_p5 = scmp.ge.s32.totalorder %s575_s12, 1 }
   0x9   : > { %p630_p4 = por %p799_p1, %p39_p0  ;;  %p97_p7 = scmp.lt.s32.totalorder %s575_s12, 3 }
   0xa   : > { %p635_p6 = por %p90_p3, %p39_p0  ;;  %s577_s18 = smov [#allocation5]  }
   0xb   : > { %s802_s15 = scalar_select %p630_p4, 1, 0 }
   0xc   : > { %s803_s16 = scalar_select %p635_p6, 1, 0 }
   0xd   : > { %p640_p8 = pnand %p349_p5, %p97_p7  ;;  %s109_s19 = sshll.u32 %s577_s18, 4  ;;  %s644_s19 = int_to_ptr.vmem [resolvable:$true] %s109_s19 }
   0xe   : > { %s656_s21 = sadd.s32 1, %s575_s12   ;;  %s26_s22 = sadd.s32 1, %s571_s11 }
   0xf   : > { %s804_s17 = scalar_select %p640_p8, 1, 0 }
  0x10   : > { %p393_p9 = pneg %p640_p8  ;;  %s23_s23 = ssub.s32 %s575_s12, %s656_s21 }
  0x11   : > { %s447_s26 = scalar_lea.hbm %s797_s1, 512 }
  0x12   : > { %p651_p11 = pnand %p393_p9, %p799_p1  ;;  %p448_p12 = scmp.ne.s32.totalorder %s797_s1, %s447_s26 }
  0x13   : > { %p454_p5 = scmp.lt.u32.totalorder %s447_s26, %s797_s1 }
  0x14   : > { %p449_p13 = pneg %p651_p11 }
  0x16   : > { %p450_p0 = pnand %p449_p13, %p448_p12 }
  0x18   : > { %p451_p3 = pneg %p450_p0 }
  0x1a   : > { %p456_p7 = pnand %p454_p5, %p451_p3 }
  0x1c   : > { %459 = shalt.err (!%p456_p7)
}
  0x1d   : > { %s460_s3 = scalar_lea.vmem %s644_s19, 512  ;;  %p468_p2 = scmp.lt.s32.totalorder %s644_s19, %s644_s19 }
  0x1e   : > { %p461_p9 = scmp.ne.s32.totalorder %s644_s19, %s460_s3  ;;  %p469_p6 = scmp.lt.s32.totalorder %s460_s3, %s460_s3 }
  0x20   : > { %p463_p10 = pnand %p461_p9, %p449_p13  ;;  %p470_p4 = por %p469_p6, %p468_p2 }
  0x22   : > { %p464_p1 = pneg %p463_p10 }
  0x24   : > { %p471_p8 = pnand %p470_p4, %p464_p1 }
  0x26   : > { %474 = shalt.err (!%p471_p8)
}
  0x27   : > { %s578_s4 = smov 128   ;;  %s579_s5 = smov 8  }
  0x28   : > { %396 = dma.hbm_to_vmem [thread:$0]  (!%p651_p11), %s797_s1, 512, %s644_s19, [#allocation6], %s578_s4, %s578_s4, %s579_s5  }
  0x29   : > { %p24_p2 = scmp.eq.s32.totalorder %s23_s23, 0  ;;  %p33_p1 = scmp.ne.s32.totalorder %s571_s11, %s567_s10 }
  0x2a   : > { %p34_p4 = scmp.eq.s32.totalorder %s575_s12, 0  ;;  %p406_p6 = scmp.lt.s32.totalorder %s575_s12, 2 }
  0x2b   : > { %s687_s8 = scalar_select %p24_p2, %s571_s11, %s26_s22  }
  0x2c   : > { %p35_p8 = por %p34_p4, %p33_p1  ;;  %p806_p10 = scmp.eq.s32.totalorder %s621_s13, 1 }
  0x2d   : > { %s123_s18 = sand.u32 1, %s571_s11   ;;  %s353_s24 = sshll.u32 %s575_s12, 7 }
  0x2e   : > { %p691_p12 = por %p806_p10, %p33_p1  ;;  %s352_s25 = sshll.u32 %s123_s18, 3 }
  0x2f   : > { %s700_s27 = scalar_lea.hbm %s796_s0, %s353_s24  ;;  %s127_s19 = scalar_lea.vmem [#allocation2], %s352_s25 }
  0x30   : > { %s134_s22 = sshll.u32 %s127_s19, 4  ;;  %p702_p11 = pnand %p406_p6, %p35_p8  ;;  %s706_s22 = int_to_ptr.vmem [resolvable:$true] %s134_s22 }
  0x31   : > { %s124_s28 = scalar_lea.sflag [#allocation3], %s123_s18  ;;  %s475_s29 = scalar_lea.hbm %s700_s27, 128 }
  0x32   : > { %p476_p13 = scmp.ne.s32.totalorder %s700_s27, %s475_s29  ;;  %p477_p0 = pneg %p702_p11 }
  0x33   : > { %s480_s4 = scalar_lea.hbm %s796_s0, 256  ;;  %p481_p7 = scmp.lt.u32.totalorder %s700_s27, %s796_s0 }
  0x34   : > { %p478_p3 = pnand %p477_p0, %p476_p13  ;;  %p482_p9 = scmp.lt.u32.totalorder %s480_s4, %s475_s29 }
  0x35   : > { %p484_p1 = scmp.lt.u32.totalorder %s475_s29, %s700_s27 }
  0x36   : > { %p479_p5 = pneg %p478_p3  ;;  %p483_p2 = por %p482_p9, %p481_p7 }
  0x38   : > { %p485_p4 = por %p484_p1, %p483_p2 }
  0x3a   : > { %p486_p6 = pnand %p485_p4, %p479_p5 }
  0x3c   : > { %489 = shalt.err (!%p486_p6)
}
  0x3d   : > { %s490_s7 = scalar_lea.vmem %s706_s22, 128  ;;  %s580_s18 = smov [#allocation2]  }
  0x3e   : > { %p491_p8 = scmp.ne.s32.totalorder %s706_s22, %s490_s7  ;;  %s495_s24 = sshll.u32 %s580_s18, 4  ;;  %s496_s24 = int_to_ptr.vmem [resolvable:$false] %s495_s24 }
  0x3f   : > { %s497_s25 = scalar_lea.vmem %s496_s24, 256  ;;  %p498_p3 = scmp.lt.s32.totalorder %s706_s22, %s496_s24 }
  0x40   : > { %p493_p10 = pnand %p491_p8, %p477_p0  ;;  %p499_p7 = scmp.lt.s32.totalorder %s497_s25, %s490_s7 }
  0x42   : > { %p494_p13 = pneg %p493_p10  ;;  %p500_p9 = por %p499_p7, %p498_p3 }
  0x44   : > { %p501_p2 = pnand %p500_p9, %p494_p13 }
  0x46   : > { %504 = shalt.err (!%p501_p2)
}
  0x47   : > { %400 = dma.hbm_to_vmem [thread:$0]  (!%p702_p11), %s700_s27, 128, %s706_s22, %s124_s28  }
  0x48   : > { %p809_p5 = scmp.ne.s32.totalorder %s804_s17, 0 }
  0x49   : > { %s736_s20 = sand.u32 (!%p809_p5), 1, %s567_s10   ;;  %p810_p0 = scmp.ne.s32.totalorder (!%p809_p5), %s802_s15, 0 }
  0x4a   : > { %143 = sbr.rel (%p809_p5) target bundleno = 321 (0x141), region = 28  ;;  %s355_s26 = sshll.u32 (!%p809_p5), %s736_s20, 3 }
  0x4b   : > { %s146_s19 = scalar_lea.sflag (!%p809_p5), [#allocation3], %s736_s20  ;;  %s149_s29 = scalar_lea.vmem (!%p809_p5), [#allocation2], %s355_s26 }
  0x51   : > { %550 = dma.done.wait (%p810_p0), %s146_s19, 128  }
  0x52   : > { %552 = vsyncadd (%p810_p0), %s146_s19, 4294967168  ;;  %p811_p1 = scmp.eq.s32.totalorder %s621_s13, 0 }
  0x54   : > { %554 = dma.done.wait (%p811_p1), [#allocation6], 512   ;;  %p812_p11 = pmov %p811_p1 }
  0x55   : > { %v581_v0 = vmov 0.0|0.0   ;;  %vm582_vm0 = vmmov 0   ;;  %v583_v1 = vmov 0.0   ;;  %v175_v2 = vld [vmem:[#allocation5] sm:$0xff]  ;;  %v176_v3 = vld [vmem:[#allocation5 + $0x8] sm:$0xff]  ;;  %v177_v4 = vld [vmem:[#allocation5 + $0x10] sm:$0xff] }
  0x56   : > { %556 = vsyncadd (%p812_p11), [#allocation6], 4294966784  ;;  %379 = vmatprep.subr.bf16.mxu0 %v581_v0  ;;  %376 = vmatprep.mubr.msk.f32.mxu0 %vm582_vm0, %v583_v1  ;;  %v380_v5 = vpack.c.bf16 %v176_v3, %v175_v2  ;;  %v178_v6 = vld [vmem:[#allocation5 + $0x18] sm:$0xff]  ;;  %vm179_vm1 = vcmask 261120   ;;  %s173_s15 = scalar_lea.vmem [#allocation7], %s355_s26  ;;  %s360_s27 = sshll.u32 %s621_s13, 7 }
  0x57   : > { %v383_v7 = vpack.c.bf16 %v178_v6, %v177_v4  ;;  %v174_v8 = vld [vmem:[%s149_s29] sm:$0xff]  ;;  %s268_s17 = sshll.u32 %s173_s15, 4  ;;  %s754_s28 = scalar_lea.hbm %s798_s2, %s360_s27  ;;  %s749_s17 = int_to_ptr.vmem [resolvable:$true] %s268_s17 }
  0x58   : > { %381 = vmatpush3.bf16.msra.mxu0 %v380_v5  ;;  %s255_s30 = scalar_lea.sflag [#allocation4], %s736_s20  ;;  %s505_s3 = scalar_lea.vmem %s749_s17, 128 }
  0x59   : > { %382 = vmatprep.subr.bf16.mxu0 %v581_v0  ;;  %p506_p4 = scmp.ne.s32.totalorder %s749_s17, %s505_s3  ;;  %s584_s13 = smov [#allocation7]  }
  0x5a   : > { %s509_s4 = sshll.u32 %s584_s13, 4  ;;  %s510_s4 = int_to_ptr.vmem [resolvable:$false] %s509_s4 }
  0x5b   : > { %p507_p6 = pnand %p506_p4, %p691_p12  ;;  %s511_s5 = scalar_lea.vmem %s510_s4, 256 }
  0x5c   : > { %384 = vmatpush3.bf16.msra.mxu0 %v383_v7  ;;  %p512_p10 = scmp.lt.s32.totalorder %s749_s17, %s510_s4  ;;  %p513_p13 = scmp.lt.s32.totalorder %s511_s5, %s505_s3 }
  0x5d   : > { %p508_p8 = pneg %p507_p6 }
  0x5e   : > { %p514_p3 = por %p513_p13, %p512_p10 }
  0x5f   : > { %377 = vmatmul.mubr.msk.f32.vlgmr.msra.gmra.mrb[0].mxu0 %vm179_vm1, %v174_v8 }
  0x60   : > { %p515_p7 = pnand %p514_p3, %p508_p8 }
 0x132   : > { %v249_v9 = vpop.f32.mrb[0].mxu0 }
 0x133   : > { %253 = vst [vmem:[%s173_s15] sm:$0xff] %v249_v9  ;;  %v378_v10 = vpop.f32.mrb[1].mxu0 }
 0x134   : > { %518 = shalt.err (!%p515_p7)
}
 0x135   : > { %s519_s6 = scalar_lea.hbm %s754_s28, 128  ;;  %s523_s24 = scalar_lea.hbm %s798_s2, 256 }
 0x136   : > { %p520_p9 = scmp.ne.s32.totalorder %s754_s28, %s519_s6  ;;  %p524_p0 = scmp.lt.u32.totalorder %s754_s28, %s798_s2 }
 0x137   : > { %p525_p1 = scmp.lt.u32.totalorder %s523_s24, %s519_s6  ;;  %p527_p4 = scmp.lt.u32.totalorder %s519_s6, %s754_s28 }
 0x138   : > { %p521_p2 = pnand %p520_p9, %p691_p12 }
 0x139   : > { %p526_p11 = por %p525_p1, %p524_p0 }
 0x13a   : > { %p522_p5 = pneg %p521_p2 }
 0x13b   : > { %p528_p6 = por %p527_p4, %p526_p11 }
 0x13d   : > { %p529_p8 = pnand %p528_p6, %p522_p5 }
 0x13f   : > { %532 = shalt.err (!%p529_p8)
}
 0x140   : > { %391 = dma.vmem_to_hbm [thread:$0]  (%p691_p12), %s749_s17, 128, %s754_s28, %s255_s30  }
 0x141 PF: > { %s280_s26 = sand.u32 1, %s563_s9   ;;  %p813_p10 = scmp.ne.s32.totalorder %s803_s16, 0 }
 0x142   : > { %p814_p13 = scmp.ge.s32.totalorder %s575_s12, 2  ;;  %s281_s19 = scalar_lea.sflag [#allocation4], %s280_s26 }
 0x144   : > { %p402_p3 = pnand %p814_p13, %p813_p10 }
 0x146   : > { %558 = dma.done.wait (!%p402_p3), %s281_s19, 128  }
 0x147   : > { %560 = vsyncadd (!%p402_p3), %s281_s19, 4294967168  ;;  %p16_p7 = scmp.ge.s32.totalorder %s656_s21, 4   ;;  %s815_s9 = smov %s567_s10 }
 0x148   : > { %s816_s10 = smov %s571_s11  ;;  %s817_s11 = smov %s687_s8 }
 0x149   : > { %s818_s12 = smov %s656_s21  ;;  %18 = sbr.rel (!%p16_p7) target bundleno = 6 (0x6), region = 77 }
 0x150   :  { %286 = vsyncpa [#allocation3], 1 }
 0x151   :  { %288 = vsyncpa [#allocation3 + $0x1], 1 }
 0x152   :  { %289 = vsyncpa [#allocation6], 1 }
 0x153   :  { %290 = vsyncpa [#allocation4], 1 }
 0x154   :  { %292 = vsyncpa [#allocation4 + $0x1], 1 }

</bundles_post_ra>
